<compile_context>
chip_gen: v6e
topology: v6e:2x2x1
jax: 0.10.0
libtpu: 0.0.40
codegen_flags: <defaults>
</compile_context>

<pallas_src>
import functools
import math

import jax
import jax.numpy as jnp
from jax.experimental import pallas as pl
from jax.experimental.pallas import tpu as pltpu


def _attn_dropout_kernel(bits_ref, q_ref, k_ref, v_ref, o_ref, *, dropout_p):
    q = q_ref[...]          # (Bb, Sq, D)   f32
    k = k_ref[...]          # (Bb, Skv, D)  f32
    v = v_ref[...]          # (Bb, Skv, D)  f32

    d = q.shape[-1]
    scale = jnp.float32(math.sqrt(d))   # intentionally MULTIPLIED, as in the module

    # qk = q @ k^T as a non-transposing NT contraction (MXU consumes k directly,
    # no XLU transpose of the lane-major D slab).
    qk = jax.lax.dot_general(
        q, k,
        dimension_numbers=(((2,), (2,)), ((0,), (0,))),
        preferred_element_type=jnp.float32,
    )                                            # (Bb, Sq, Skv)
    qk = qk * scale

    # numerically stable softmax over the last dim
    m = jnp.max(qk, axis=-1, keepdims=True)      # (Bb, Sq, 1)
    e = jnp.exp(qk - m)                          # (Bb, Sq, Skv)
    denom = jnp.sum(e, axis=-1, keepdims=True)   # (Bb, Sq, 1)

    if dropout_p > 0.0:
        # Integer-threshold dropout on raw uint32 bits:
        #   P(bits < thresh) ~= dropout_p  ->  keep iff bits >= thresh.
        thresh = jnp.uint32(min(int(round(dropout_p * (1 << 32))), (1 << 32) - 1))
        keep = bits_ref[...] >= thresh           # (Bb, Sq, Skv) bool
        # Fold softmax normalization and the 1/(1-p) dropout rescale into one
        # per-row factor -> one multiply + one select over the (Sq, Skv) tile.
        row_factor = jnp.float32(1.0 / (1.0 - dropout_p)) / denom
        p = jnp.where(keep, e * row_factor, jnp.float32(0.0))
    else:
        p = e / denom

    # output = dropout_qk @ v
    o_ref[...] = jax.lax.dot_general(
        p, v,
        dimension_numbers=(((2,), (1,)), ((0,), (0,))),
        preferred_element_type=jnp.float32,
    ).astype(o_ref.dtype)                        # (Bb, Sq, D)


def attention_dropout(q, k, v, dropout_p, rng_key, batch_block=None):
    B, Sq, D = q.shape
    _, Skv, Dk = k.shape
    assert Dk == D and v.shape == (B, Skv, D)
    dropout_p = float(dropout_p)
    assert 0.0 <= dropout_p < 1.0

    # Block several batch elements per grid step (amortize per-step overhead).
    if batch_block is None:
        batch_block = B if B <= 8 else next(bb for bb in (8, 4, 2, 1) if B % bb == 0)
    Bb = batch_block
    assert B % Bb == 0
    grid = (B // Bb,)

    # Deterministic dropout bits, generated once outside the kernel
    # (the in-kernel hardware PRNG has no interpret/CPU lowering).
    if dropout_p > 0.0:
        bits = jax.random.bits(rng_key, (B, Sq, Skv), dtype=jnp.uint32)
    else:
        bits = jnp.zeros((B, Sq, Skv), dtype=jnp.uint32)

    kernel = functools.partial(_attn_dropout_kernel, dropout_p=dropout_p)

    return pl.pallas_call(
        kernel,
        out_shape=jax.ShapeDtypeStruct((B, Sq, D), jnp.float32),
        grid_spec=pl.GridSpec(
            grid=grid,
            in_specs=[
                pl.BlockSpec((Bb, Sq, Skv), lambda b: (b, 0, 0)),
                pl.BlockSpec((Bb, Sq, D), lambda b: (b, 0, 0)),
                pl.BlockSpec((Bb, Skv, D), lambda b: (b, 0, 0)),
                pl.BlockSpec((Bb, Skv, D), lambda b: (b, 0, 0)),
            ],
            out_specs=pl.BlockSpec((Bb, Sq, D), lambda b: (b, 0, 0)),
        ),
        # No in-kernel PRNG state -> batch steps are independent; "parallel"
        # lets v7x shard them across its two TensorCores (no-op on v5e/v6e).
        compiler_params=pltpu.CompilerParams(
            dimension_semantics=("parallel",)),
    )(bits, q, k, v)


if __name__ == "__main__":
    # Small TPU-aligned shapes consistent with the module's
    # (B, Sq, D) x (B, Skv, D) attention (original: (1,58,768)/(1,19,768)).
    B, Sq, Skv, D = 2, 64, 32, 128
    dropout_p = 0.1

    key = jax.random.PRNGKey(0)
    kq, kk, kv, kd = jax.random.split(key, 4)
    q = jax.random.normal(kq, (B, Sq, D), dtype=jnp.float32)
    k = jax.random.normal(kk, (B, Skv, D), dtype=jnp.float32) * 0.15
    v = jax.random.normal(kv, (B, Skv, D), dtype=jnp.float32) * 0.15

    out = attention_dropout(q, k, v, dropout_p, kd)
    jax.block_until_ready(out)

    assert out.shape == (B, Sq, D) and out.dtype == jnp.float32
    assert bool(jnp.all(jnp.isfinite(out)))
    print("KERNEL_OK")
</pallas_src>

<mosaic_0001>
module attributes {stable_mosaic.version = 11 : i64} {
  func.func @_attn_dropout_kernel(%arg0: i32, %arg1: memref<2x64x32xi32, #tpu.memory_space<vmem>>, %arg2: memref<2x64x128xf32, #tpu.memory_space<vmem>>, %arg3: memref<2x32x128xf32, #tpu.memory_space<vmem>>, %arg4: memref<2x32x128xf32, #tpu.memory_space<vmem>>, %arg5: memref<2x64x128xf32, #tpu.memory_space<vmem>>) attributes {dimension_semantics = [#tpu.dimension_semantics<parallel>], iteration_bounds = array<i64: 1>, scalar_prefetch = 0 : i64, scratch_operands = 0 : i64, tpu.core_type = #tpu.core_type<tc>, window_params = [{transform_indices = @transform_0, window_bounds = array<i64: 2, 64, 32>}, {transform_indices = @transform_1, window_bounds = array<i64: 2, 64, 128>}, {transform_indices = @transform_2, window_bounds = array<i64: 2, 32, 128>}, {transform_indices = @transform_3, window_bounds = array<i64: 2, 32, 128>}, {transform_indices = @transform_4, window_bounds = array<i64: 2, 64, 128>}]} {
    %c0 = arith.constant 0 : index
    %c0_0 = arith.constant 0 : index
    %c0_1 = arith.constant 0 : index
    %0 = vector.load %arg2[%c0, %c0_0, %c0_1] : memref<2x64x128xf32, #tpu.memory_space<vmem>>, vector<2x64x128xf32>
    %c0_2 = arith.constant 0 : index
    %c0_3 = arith.constant 0 : index
    %c0_4 = arith.constant 0 : index
    %1 = vector.load %arg3[%c0_2, %c0_3, %c0_4] : memref<2x32x128xf32, #tpu.memory_space<vmem>>, vector<2x32x128xf32>
    %c0_5 = arith.constant 0 : index
    %c0_6 = arith.constant 0 : index
    %c0_7 = arith.constant 0 : index
    %2 = vector.load %arg4[%c0_5, %c0_6, %c0_7] : memref<2x32x128xf32, #tpu.memory_space<vmem>>, vector<2x32x128xf32>
    %cst = arith.constant dense<0.000000e+00> : vector<2x64x32xf32>
    %3 = tpu.matmul %0, %1, %cst {dimension_numbers = #tpu.dot_dimension_numbers<[2], [2], [1], [1], [0, 0, 0, 1, 1, 1], [0], [0]>} : vector<2x64x128xf32>, vector<2x32x128xf32>, vector<2x64x32xf32> -> vector<2x64x32xf32>
    %cst_8 = arith.constant 11.3137083 : f32
    %4 = vector.broadcast %cst_8 : f32 to vector<2x64x32xf32>
    %5 = arith.mulf %3, %4 : vector<2x64x32xf32>
    %cst_9 = arith.constant dense<0xFF800000> : vector<2x64xf32>
    %6 = vector.multi_reduction <maximumf>, %5, %cst_9 [2] : vector<2x64x32xf32> to vector<2x64xf32>
    %7 = vector.shape_cast %6 : vector<2x64xf32> to vector<2x64x1xf32>
    %8 = vector.broadcast %7 : vector<2x64x1xf32> to vector<2x64x32xf32>
    %9 = arith.subf %5, %8 : vector<2x64x32xf32>
    %10 = math.exp %9 : vector<2x64x32xf32>
    %cst_10 = arith.constant dense<0.000000e+00> : vector<2x64xf32>
    %11 = vector.multi_reduction <add>, %10, %cst_10 [2] : vector<2x64x32xf32> to vector<2x64xf32>
    %12 = vector.shape_cast %11 : vector<2x64xf32> to vector<2x64x1xf32>
    %c0_11 = arith.constant 0 : index
    %c0_12 = arith.constant 0 : index
    %c0_13 = arith.constant 0 : index
    %13 = vector.load %arg1[%c0_11, %c0_12, %c0_13] : memref<2x64x32xi32, #tpu.memory_space<vmem>>, vector<2x64x32xi32>
    %c429496730_i32 = arith.constant 429496730 : i32
    %14 = vector.broadcast %c429496730_i32 : i32 to vector<2x64x32xi32>
    %15 = arith.cmpi uge, %13, %14 : vector<2x64x32xi32>
    %cst_14 = arith.constant 1.11111116 : f32
    %16 = vector.broadcast %cst_14 : f32 to vector<2x64x1xf32>
    %17 = arith.divf %16, %12 : vector<2x64x1xf32>
    %18 = vector.broadcast %17 : vector<2x64x1xf32> to vector<2x64x32xf32>
    %19 = arith.mulf %10, %18 : vector<2x64x32xf32>
    %cst_15 = arith.constant 0.000000e+00 : f32
    %20 = vector.broadcast %cst_15 : f32 to vector<2x64x32xf32>
    %21 = arith.select %15, %19, %20 : vector<2x64x32xi1>, vector<2x64x32xf32>
    %cst_16 = arith.constant dense<0.000000e+00> : vector<2x64x128xf32>
    %22 = tpu.matmul %21, %2, %cst_16 {dimension_numbers = #tpu.dot_dimension_numbers<[2], [1], [1], [2], [0, 0, 0, 1, 1, 2], [0], [0]>} : vector<2x64x32xf32>, vector<2x32x128xf32>, vector<2x64x128xf32> -> vector<2x64x128xf32>
    %c0_17 = arith.constant 0 : index
    %c0_18 = arith.constant 0 : index
    %c0_19 = arith.constant 0 : index
    %23 = vector.load %arg5[%c0_17, %c0_18, %c0_19] : memref<2x64x128xf32, #tpu.memory_space<vmem>>, vector<2x64x128xf32>
    tpu.vector_store %arg5[%c0_17, %c0_18, %c0_19], %22 {strides = array<i32>} : memref<2x64x128xf32, #tpu.memory_space<vmem>>, vector<2x64x128xf32>,
    return
  }
  func.func @transform_0(%arg0: i32) -> (i32, i32, i32) {
    %c0_i32 = arith.constant 0 : i32
    %c0_i32_0 = arith.constant 0 : i32
    %c0_i32_1 = arith.constant 0 : i32
    return %arg0, %c0_i32, %c0_i32_0 : i32, i32, i32
  }
  func.func @transform_1(%arg0: i32) -> (i32, i32, i32) {
    %c0_i32 = arith.constant 0 : i32
    %c0_i32_0 = arith.constant 0 : i32
    %c0_i32_1 = arith.constant 0 : i32
    return %arg0, %c0_i32, %c0_i32_0 : i32, i32, i32
  }
  func.func @transform_2(%arg0: i32) -> (i32, i32, i32) {
    %c0_i32 = arith.constant 0 : i32
    %c0_i32_0 = arith.constant 0 : i32
    %c0_i32_1 = arith.constant 0 : i32
    return %arg0, %c0_i32, %c0_i32_0 : i32, i32, i32
  }
  func.func @transform_3(%arg0: i32) -> (i32, i32, i32) {
    %c0_i32 = arith.constant 0 : i32
    %c0_i32_0 = arith.constant 0 : i32
    %c0_i32_1 = arith.constant 0 : i32
    return %arg0, %c0_i32, %c0_i32_0 : i32, i32, i32
  }
  func.func @transform_4(%arg0: i32) -> (i32, i32, i32) {
    %c0_i32 = arith.constant 0 : i32
    %c0_i32_0 = arith.constant 0 : i32
    %c0_i32_1 = arith.constant 0 : i32
    return %arg0, %c0_i32, %c0_i32_0 : i32, i32, i32
  }
}

</mosaic_0001>

<bundles_post_ra>
// kernel: tpu_custom_call.1
= control target key start
LH: loop header
LB: loop body
LE: loop exit
PB: predicated region body
PF: predicated region fallthrough
CT: control target
= control target key end

     0   :  { %9 = vsyncpa [#allocation3], 0  ;;  %s1415_s0 = inlined_call_operand.vmem [shape: u32[2,64,32], index: 0, kind: input, shape index: {}]   ;;  %s1416_s1 = inlined_call_operand.vmem [shape: f32[2,64,128], index: 1, kind: input, shape index: {}]   ;;  %s1417_s2 = inlined_call_operand.vmem [shape: f32[2,32,128], index: 2, kind: input, shape index: {}]   ;;  %s1418_s3 = inlined_call_operand.hbm [shape: f32[2,32,128], index: 3, kind: input, shape index: {}]   ;;  %s1419_s4 = inlined_call_operand.hbm [shape: f32[2,64,128], index: 4, kind: output, shape index: {}]  }
   0x1   :  { %10 = vsyncpa [#allocation4], 0  ;;  %s1078_s15 = smov [#allocation2]  }
   0x2   :  { %s22_s16 = sshll.u32 %s1078_s15, 4  ;;  %s23_s16 = int_to_ptr.vmem [resolvable:$true] %s22_s16 }
   0x3   :  { %s1042_s17 = scalar_lea.vmem %s23_s16, 1024  ;;  %p1047_p1 = scmp.lt.s32.totalorder %s23_s16, %s23_s16 }
   0x4   :  { %p1043_p0 = scmp.ne.s32.totalorder %s23_s16, %s1042_s17  ;;  %p1048_p2 = scmp.lt.s32.totalorder %s1042_s17, %s1042_s17 }
   0x6   :  { %p1049_p3 = por %p1048_p2, %p1047_p1 }
   0x8   :  { %p1050_p4 = pnand %p1049_p3, %p1043_p0 }
   0xa   :  { %1053 = shalt.err (!%p1050_p4)
}
   0xb   :  { %s1079_s18 = smov 128   ;;  %s1080_s19 = smov 8  }
   0xc   :  { %28 = dma.hbm_to_vmem [thread:$0]  %s1418_s3, 1024, %s23_s16, [#allocation3], %s1079_s18, %s1079_s18, %s1080_s19  }
   0xd   :  { %1074 = dma.done.wait [#allocation3], 1024  }
   0xe   :  { %1075 = vsyncadd [#allocation3], 4294966272  ;;  %v51_v0 = vld [vmem:[%s1417_s2 + $0x18] sm:$0xff]  ;;  %v50_v2 = vld [vmem:[%s1417_s2 + $0x10] sm:$0xff]  ;;  %vm290_vm0 = vcmask 261120  }
   0xf   :  { %v55_v1 = vld [vmem:[%s1417_s2 + $0x38] sm:$0xff]  ;;  %886 = vmatprep.subr.mxu0 %v51_v0  ;;  %v54_v3 = vld [vmem:[%s1417_s2 + $0x30] sm:$0xff]  ;;  %v32_v4 = vld [vmem:[%s1416_s1] sm:$0xff] }
  0x10   :  { %906 = vmatprep.subr.mxu1 %v55_v1  ;;  %887 = vmatpush3.xpose.msra.mxu0 %v51_v0  ;;  %v40_v5 = vld [vmem:[%s1416_s1 + $0x40] sm:$0xff]  ;;  %v49_v6 = vld [vmem:[%s1417_s2 + $0x8] sm:$0xff]  ;;  %v42_v12 = vld [vmem:[%s1416_s1 + $0x50] sm:$0xff] }
  0x11   :  { %907 = vmatpush3.xpose.msra.mxu1 %v55_v1  ;;  %888 = vmatprep.subr.mxu0 %v50_v2  ;;  %v53_v7 = vld [vmem:[%s1417_s2 + $0x28] sm:$0xff]  ;;  %v48_v8 = vld [vmem:[%s1417_s2] sm:$0xff]  ;;  %v34_v13 = vld [vmem:[%s1416_s1 + $0x10] sm:$0xff] }
  0x12   :  { %908 = vmatprep.subr.mxu1 %v54_v3  ;;  %894 = vmatprep.mubr.f32.mxu0 %v32_v4  ;;  %v52_v9 = vld [vmem:[%s1417_s2 + $0x20] sm:$0xff]  ;;  %v33_v10 = vld [vmem:[%s1416_s1 + $0x8] sm:$0xff]  ;;  %v43_v14 = vld [vmem:[%s1416_s1 + $0x58] sm:$0xff] }
  0x13   :  { %914 = vmatprep.mubr.f32.mxu1 %v40_v5  ;;  %v41_v11 = vld [vmem:[%s1416_s1 + $0x48] sm:$0xff]  ;;  %v35_v15 = vld [vmem:[%s1416_s1 + $0x18] sm:$0xff]  ;;  %v44_v16 = vld [vmem:[%s1416_s1 + $0x60] sm:$0xff] }
  0x14   :  { %889 = vmatpush3.xpose.msra.mxu0 %v50_v2  ;;  %v36_v17 = vld [vmem:[%s1416_s1 + $0x20] sm:$0xff]  ;;  %v45_v18 = vld [vmem:[%s1416_s1 + $0x68] sm:$0xff]  ;;  %v46_v20 = vld [vmem:[%s1416_s1 + $0x70] sm:$0xff] }
  0x15   :  { %909 = vmatpush3.xpose.msra.mxu1 %v54_v3  ;;  %890 = vmatprep.subr.mxu0 %v49_v6  ;;  %v37_v19 = vld [vmem:[%s1416_s1 + $0x28] sm:$0xff]  ;;  %v38_v21 = vld [vmem:[%s1416_s1 + $0x30] sm:$0xff]  ;;  %v47_v22 = vld [vmem:[%s1416_s1 + $0x78] sm:$0xff] }
  0x16   :  { %910 = vmatprep.subr.mxu1 %v53_v7  ;;  %v39_v23 = vld [vmem:[%s1416_s1 + $0x38] sm:$0xff] }
  0x18   :  { %891 = vmatpush3.xpose.msra.mxu0 %v49_v6 }
  0x19   :  { %911 = vmatpush3.xpose.msra.mxu1 %v53_v7  ;;  %892 = vmatprep.subr.mxu0 %v48_v8 }
  0x1a   :  { %912 = vmatprep.subr.mxu1 %v52_v9 }
  0x1c   :  { %893 = vmatpush3.xpose.msra.mxu0 %v48_v8 }
  0x1d   :  { %913 = vmatpush3.xpose.msra.mxu1 %v52_v9 }
  0x1f   :  { %895 = vmatmul.mubr.f32.vlgmr.msra.gmra.mxu0 %v33_v10 }
  0x20   :  { %915 = vmatmul.mubr.f32.vlgmr.msra.gmra.mxu1 %v41_v11  ;;  %897 = vmatprep.mubr.f32.mxu0 %v34_v13 }
  0x21   :  { %917 = vmatprep.mubr.f32.mxu1 %v42_v12 }
  0x23   :  { %898 = vmatmul.mubr.f32.gmra.mxu0 %v35_v15 }
  0x24   :  { %918 = vmatmul.mubr.f32.gmra.mxu1 %v43_v14  ;;  %900 = vmatprep.mubr.f32.mxu0 %v36_v17 }
  0x25   :  { %920 = vmatprep.mubr.f32.mxu1 %v44_v16 }
  0x27   :  { %901 = vmatmul.mubr.f32.gmra.mxu0 %v37_v19 }
  0x28   :  { %921 = vmatmul.mubr.f32.gmra.mxu1 %v45_v18  ;;  %903 = vmatprep.mubr.f32.mxu0 %v38_v21 }
  0x29   :  { %923 = vmatprep.mubr.f32.mxu1 %v46_v20 }
  0x2b   :  { %904 = vmatmul.mubr.f32.gmra.mxu0 %v39_v23 }
  0x2c   :  { %924 = vmatmul.mubr.f32.gmra.mxu1 %v47_v22 }
  0xdf   :  { %v896_v24 = vpop.f32.mrf.mxu0 }
  0xe0   :  { %v916_v25 = vpop.f32.mrf.mxu1  ;;  %v1185_v26 = vmul.f32 11.313708, %v896_v24 }
  0xe1   :  { %v1187_v27 = vmul.f32 11.313708, %v916_v25  ;;  %v130_v28 = vpop.f32.mrf.mxu0 }
  0xe2   :  { %v235_v29 = vpop.f32.mrf.mxu1  ;;  %v1189_v30 = vmul.f32 11.313708, %v130_v28  ;;  %v294_v31 = vsel %vm290_vm0, %v1185_v26, -inf }
  0xe3   :  { %295 = vmax.xlane.f32.xlu1 %v294_v31  ;;  %v899_v33 = vpop.f32.mrf.mxu0  ;;  %v1193_v34 = vmul.f32 11.313708, %v235_v29  ;;  %v318_v37 = vsel %vm290_vm0, %v1187_v27, -inf }
  0xe4   :  { %v919_v32 = vpop.f32.mrf.mxu1  ;;  %v291_v35 = vsel %vm290_vm0, %v1189_v30, -inf  ;;  %v1201_v39 = vmul.f32 11.313708, %v899_v33 }
  0xe5   :  { %v1197_v36 = vmul.f32 11.313708, %v919_v32  ;;  %292 = vmax.xlane.f32.xlu0 %v291_v35  ;;  %v140_v40 = vpop.f32.mrf.mxu0  ;;  %v315_v42 = vsel %vm290_vm0, %v1193_v34, -inf }
  0xe6   :  { %v245_v38 = vpop.f32.mrf.mxu1  ;;  %v300_v47 = vsel %vm290_vm0, %v1201_v39, -inf  ;;  %v1211_v48 = vmul.f32 11.313708, %v140_v40 }
  0xe7   :  { %319 = vmax.xlane.f32.xlu1 %v318_v37  ;;  %v1205_v43 = vmul.f32 11.313708, %v245_v38  ;;  %v324_v44 = vsel %vm290_vm0, %v1197_v36, -inf  ;;  %v902_v45 = vpop.f32.mrf.mxu0 }
  0xe8   :  { %v922_v41 = vpop.f32.mrf.mxu1  ;;  %v1217_v53 = vmul.f32 11.313708, %v902_v45  ;;  %v297_v55 = vsel %vm290_vm0, %v1211_v48, -inf }
  0xe9   :  { %316 = vmax.xlane.f32.xlu0 %v315_v42  ;;  %v1213_v49 = vmul.f32 11.313708, %v922_v41  ;;  %v321_v50 = vsel %vm290_vm0, %v1205_v43, -inf  ;;  %v150_v51 = vpop.f32.mrf.mxu0 }
  0xea   :  { %v255_v46 = vpop.f32.mrf.mxu1  ;;  %v306_v59 = vsel %vm290_vm0, %v1217_v53, -inf  ;;  %v1227_v61 = vmul.f32 11.313708, %v150_v51 }
  0xeb   :  { %325 = vmax.xlane.f32.xlu1 %v324_v44  ;;  %v905_v54 = vpop.f32.mrf.mxu0  ;;  %v1221_v56 = vmul.f32 11.313708, %v255_v46  ;;  %v330_v57 = vsel %vm290_vm0, %v1213_v49, -inf }
  0xec   :  { %v925_v52 = vpop.f32.mrf.mxu1  ;;  %v303_v1 = vsel %vm290_vm0, %v1227_v61, -inf  ;;  %v1243_v5 = vmul.f32 11.313708, %v905_v54 }
  0xed   :  { %301 = vmax.xlane.f32.xlu0 %v300_v47  ;;  %v160_v60 = vpop.f32.mrf.mxu0  ;;  %v327_v63 = vsel %vm290_vm0, %v1221_v56, -inf  ;;  %v1239_v3 = vmul.f32 11.313708, %v925_v52 }
  0xee   :  { %v265_v58 = vpop.f32.mrf.mxu1  ;;  %v1233_v0 = vmul.f32 11.313708, %v160_v60  ;;  %v312_v7 = vsel %vm290_vm0, %v1243_v5, -inf }
  0xef   :  { %322 = vmax.xlane.f32.xlu1 %v321_v50  ;;  %v1229_v62 = vmul.f32 11.313708, %v265_v58  ;;  %v336_v6 = vsel %vm290_vm0, %v1239_v3, -inf }
  0xf0   :  { %v309_v4 = vsel %vm290_vm0, %v1233_v0, -inf }
  0xf1   :  { %298 = vmax.xlane.f32.xlu0 %v297_v55  ;;  %v333_v2 = vsel %vm290_vm0, %v1229_v62, -inf }
  0xf3   :  { %331 = vmax.xlane.f32.xlu1 %v330_v57 }
  0xf5   :  { %307 = vmax.xlane.f32.xlu0 %v306_v59 }
  0xf7   :  { %328 = vmax.xlane.f32.xlu1 %v327_v63 }
  0xf9   :  { %304 = vmax.xlane.f32.xlu0 %v303_v1 }
  0xfb   :  { %334 = vmax.xlane.f32.xlu1 %v333_v2 }
  0xfd   :  { %310 = vmax.xlane.f32.xlu0 %v309_v4 }
  0xff   :  { %337 = vmax.xlane.f32.xlu1 %v336_v6 }
 0x101   :  { %313 = vmax.xlane.f32.xlu0 %v312_v7 }
 0x16c   :  { %v296_v8 = vpop.xlane.xlu1 %295 }
 0x16d   :  { %v340_v9 = vsub.f32 %v1185_v26, %v296_v8 }
 0x16e   :  { %v293_v10 = vpop.xlane.xlu0 %292 }
 0x16f   :  { %v357_v11 = vmul.f32 1.442695, %v340_v9  ;;  %v339_v12 = vsub.f32 %v1189_v30, %v293_v10 }
 0x170   :  { %v320_v13 = vpop.xlane.xlu1 %319 }
 0x171   :  { %970 = vpow2.f32 %v357_v11  ;;  %v355_v14 = vmul.f32 1.442695, %v339_v12  ;;  %v348_v15 = vsub.f32 %v1187_v27, %v320_v13 }
 0x172   :  { %v317_v16 = vpop.xlane.xlu0 %316 }
 0x173   :  { %972 = vpow2.f32 %v355_v14  ;;  %v373_v17 = vmul.f32 1.442695, %v348_v15  ;;  %v347_v18 = vsub.f32 %v1193_v34, %v317_v16 }
 0x174   :  { %v326_v19 = vpop.xlane.xlu1 %325 }
 0x175   :  { %974 = vpow2.f32 %v373_v17  ;;  %v371_v20 = vmul.f32 1.442695, %v347_v18  ;;  %v350_v21 = vsub.f32 %v1197_v36, %v326_v19  ;;  %v59_v19 = vld [vmem:[#allocation2 + $0x18] sm:$0xff] }
 0x176   :  { %v302_v22 = vpop.xlane.xlu0 %301  ;;  %926 = vmatprep.subr.mxu0 %v59_v19 }
 0x177   :  { %976 = vpow2.f32 %v371_v20  ;;  %v377_v23 = vmul.f32 1.442695, %v350_v21  ;;  %v342_v24 = vsub.f32 %v1201_v39, %v302_v22  ;;  %927 = vmatpush3.msra.mxu0 %v59_v19 }
 0x178   :  { %v323_v25 = vpop.xlane.xlu1 %322 }
 0x179   :  { %v361_v26 = vmul.f32 1.442695, %v342_v24  ;;  %v349_v28 = vsub.f32 %v1205_v43, %v323_v25  ;;  %978 = vpow2.f32 %v377_v23  ;;  %v58_v23 = vld [vmem:[#allocation2 + $0x10] sm:$0xff]  ;;  %v57_v25 = vld [vmem:[#allocation2 + $0x8] sm:$0xff] }
 0x17a   :  { %v299_v27 = vpop.xlane.xlu0 %298  ;;  %928 = vmatprep.subr.mxu0 %v58_v23 }
 0x17b   :  { %980 = vpow2.f32 %v361_v26  ;;  %v375_v29 = vmul.f32 1.442695, %v349_v28  ;;  %v341_v30 = vsub.f32 %v1211_v48, %v299_v27  ;;  %929 = vmatpush3.msra.mxu0 %v58_v23  ;;  %v63_v26 = vld [vmem:[#allocation2 + $0x38] sm:$0xff]  ;;  %v56_v27 = vld [vmem:[#allocation2] sm:$0xff] }
 0x17c   :  { %v332_v31 = vpop.xlane.xlu1 %331  ;;  %930 = vmatprep.subr.mxu0 %v57_v25  ;;  %946 = vmatprep.subr.mxu1 %v63_v26 }
 0x17d   :  { %v359_v32 = vmul.f32 1.442695, %v341_v30  ;;  %v352_v33 = vsub.f32 %v1213_v49, %v332_v31  ;;  %982 = vpow2.f32 %v375_v29  ;;  %931 = vmatpush3.msra.mxu0 %v57_v25  ;;  %v62_v29 = vld [vmem:[#allocation2 + $0x30] sm:$0xff]  ;;  %947 = vmatpush3.msra.mxu1 %v63_v26  ;;  %v61_v30 = vld [vmem:[#allocation2 + $0x28] sm:$0xff]  ;;  %v60_v31 = vld [vmem:[#allocation2 + $0x20] sm:$0xff] }
 0x17e   :  { %v1258_v34 = vpop.eup %970  ;;  %v308_v35 = vpop.xlane.xlu0 %307  ;;  %932 = vmatprep.subr.mxu0 %v56_v27  ;;  %948 = vmatprep.subr.mxu1 %v62_v29  ;;  %v446_v26 = vld [vmem:[%s1415_s0 + $0x58] sm:$0xff] }
 0x17f   :  { %984 = vpow2.f32 %v359_v32  ;;  %v381_v36 = vmul.f32 1.442695, %v352_v33  ;;  %v344_v37 = vsub.f32 %v1217_v53, %v308_v35  ;;  %v390_v38 = vsel %vm290_vm0, %v1258_v34, 0.0  ;;  %933 = vmatpush3.msra.mxu0 %v56_v27  ;;  %949 = vmatpush3.msra.mxu1 %v62_v29 }
 0x180   :  { %v1263_v39 = vpop.eup %972  ;;  %v329_v40 = vpop.xlane.xlu1 %328  ;;  %391 = vadd.xlane.f32.xlu0 %v390_v38  ;;  %950 = vmatprep.subr.mxu1 %v61_v30  ;;  %vm462_vm8 = vcmp.ge.u32.totalorder %v446_v26, 429496730 }
 0x181   :  { %v365_v41 = vmul.f32 1.442695, %v344_v37  ;;  %v351_v42 = vsub.f32 %v1221_v56, %v329_v40  ;;  %986 = vpow2.f32 %v381_v36  ;;  %v387_v45 = vsel %vm290_vm0, %v1263_v39, 0.0  ;;  %951 = vmatpush3.msra.mxu1 %v61_v30 }
 0x182   :  { %v1266_v43 = vpop.eup %974  ;;  %v305_v44 = vpop.xlane.xlu0 %304  ;;  %952 = vmatprep.subr.mxu1 %v60_v31 }
 0x183   :  { %988 = vpow2.f32 %v365_v41  ;;  %v379_v46 = vmul.f32 1.442695, %v351_v42  ;;  %v343_v47 = vsub.f32 %v1227_v61, %v305_v44  ;;  %v414_v48 = vsel %vm290_vm0, %v1266_v43, 0.0  ;;  %953 = vmatpush3.msra.mxu1 %v60_v31 }
 0x184   :  { %v1273_v49 = vpop.eup %976  ;;  %415 = vadd.xlane.f32.xlu1 %v414_v48  ;;  %v335_v50 = vpop.xlane.xlu1 %334  ;;  %388 = vadd.xlane.f32.xlu0 %v387_v45 }
 0x185   :  { %v363_v51 = vmul.f32 1.442695, %v343_v47  ;;  %v353_v52 = vsub.f32 %v1229_v62, %v335_v50  ;;  %990 = vpow2.f32 %v379_v46  ;;  %v411_v57 = vsel %vm290_vm0, %v1273_v49, 0.0  ;;  %v435_v47 = vld [vmem:[%s1415_s0] sm:$0xff]  ;;  %v436_v50 = vld [vmem:[%s1415_s0 + $0x8] sm:$0xff] }
 0x186   :  { %v311_v53 = vpop.xlane.xlu0 %310  ;;  %v1276_v54 = vpop.eup %978  ;;  %vm451_vm1 = vcmp.ge.u32.totalorder %v435_v47, 429496730  ;;  %vm452_vm2 = vcmp.ge.u32.totalorder %v436_v50, 429496730  ;;  %v441_v50 = vld [vmem:[%s1415_s0 + $0x30] sm:$0xff] }
 0x187   :  { %992 = vpow2.f32 %v363_v51  ;;  %v383_v55 = vmul.f32 1.442695, %v353_v52  ;;  %v345_v56 = vsub.f32 %v1233_v0, %v311_v53  ;;  %v420_v4 = vsel %vm290_vm0, %v1276_v54, 0.0 }
 0x188   :  { %v1281_v58 = vpop.eup %980  ;;  %v338_v59 = vpop.xlane.xlu1 %337  ;;  %412 = vadd.xlane.f32.xlu1 %v411_v57  ;;  %vm457_vm13 = vcmp.ge.u32.totalorder %v441_v50, 429496730 }
 0x189   :  { %v367_v60 = vmul.f32 1.442695, %v345_v56  ;;  %v354_v61 = vsub.f32 %v1239_v3, %v338_v59  ;;  %v396_v62 = vsel %vm290_vm0, %v1281_v58, 0.0  ;;  %994 = vpow2.f32 %v383_v55  ;;  %v443_v56 = vld [vmem:[%s1415_s0 + $0x40] sm:$0xff]  ;;  %v444_v59 = vld [vmem:[%s1415_s0 + $0x48] sm:$0xff] }
 0x18a   :  { %397 = vadd.xlane.f32.xlu0 %v396_v62  ;;  %v314_v63 = vpop.xlane.xlu0 %313  ;;  %v1286_v1 = vpop.eup %982  ;;  %vm459_vm3 = vcmp.ge.u32.totalorder %v443_v56, 429496730  ;;  %vm460_vm4 = vcmp.ge.u32.totalorder %v444_v59, 429496730  ;;  %v449_v56 = vld [vmem:[%s1415_s0 + $0x70] sm:$0xff] }
 0x18b   :  { %996 = vpow2.f32 %v367_v60  ;;  %v385_v0 = vmul.f32 1.442695, %v354_v61  ;;  %v346_v2 = vsub.f32 %v1243_v5, %v314_v63  ;;  %v417_v9 = vsel %vm290_vm0, %v1286_v1, 0.0 }
 0x18c   :  { %v1291_v6 = vpop.eup %984  ;;  %421 = vadd.xlane.f32.xlu1 %v420_v4  ;;  %vm465_vm14 = vcmp.ge.u32.totalorder %v449_v56, 429496730 }
 0x18d   :  { %v369_v7 = vmul.f32 1.442695, %v346_v2  ;;  %v393_v3 = vsel %vm290_vm0, %v1291_v6, 0.0  ;;  %998 = vpow2.f32 %v385_v0 }
 0x18e   :  { %394 = vadd.xlane.f32.xlu0 %v393_v3  ;;  %v1295_v8 = vpop.eup %986 }
 0x18f   :  { %1000 = vpow2.f32 %v369_v7  ;;  %v426_v12 = vsel %vm290_vm0, %v1295_v8, 0.0 }
 0x190   :  { %v1299_v10 = vpop.eup %988  ;;  %418 = vadd.xlane.f32.xlu1 %v417_v9 }
 0x191   :  { %v402_v5 = vsel %vm290_vm0, %v1299_v10, 0.0 }
 0x192   :  { %403 = vadd.xlane.f32.xlu0 %v402_v5  ;;  %v1303_v11 = vpop.eup %990 }
 0x193   :  { %v423_v16 = vsel %vm290_vm0, %v1303_v11, 0.0 }
 0x194   :  { %v1307_v13 = vpop.eup %992  ;;  %427 = vadd.xlane.f32.xlu1 %v426_v12 }
 0x195   :  { %v399_v14 = vsel %vm290_vm0, %v1307_v13, 0.0 }
 0x196   :  { %400 = vadd.xlane.f32.xlu0 %v399_v14  ;;  %v1311_v15 = vpop.eup %994 }
 0x197   :  { %v429_v21 = vsel %vm290_vm0, %v1311_v15, 0.0 }
 0x198   :  { %v1315_v17 = vpop.eup %996  ;;  %424 = vadd.xlane.f32.xlu1 %v423_v16 }
 0x199   :  { %v405_v18 = vsel %vm290_vm0, %v1315_v17, 0.0 }
 0x19a   :  { %406 = vadd.xlane.f32.xlu0 %v405_v18  ;;  %v1319_v20 = vpop.eup %998 }
 0x19b   :  { %v432_v28 = vsel %vm290_vm0, %v1319_v20, 0.0 }
 0x19c   :  { %v1323_v22 = vpop.eup %1000  ;;  %430 = vadd.xlane.f32.xlu1 %v429_v21  ;;  %v445_v21 = vld [vmem:[%s1415_s0 + $0x50] sm:$0xff] }
 0x19d   :  { %v408_v24 = vsel %vm290_vm0, %v1323_v22, 0.0  ;;  %vm461_vm7 = vcmp.ge.u32.totalorder %v445_v21, 429496730 }
 0x19e   :  { %409 = vadd.xlane.f32.xlu0 %v408_v24 }
 0x1a0   :  { %433 = vadd.xlane.f32.xlu1 %v432_v28 }
 0x209   :  { %v392_v32 = vpop.xlane.xlu0 %391 }
 0x20a   :  { %1002 = vrcp.f32 %v392_v32 }
 0x20d   :  { %v416_v33 = vpop.xlane.xlu1 %415  ;;  %v389_v35 = vpop.xlane.xlu0 %388 }
 0x20e   :  { %1004 = vrcp.f32 %v416_v33 }
 0x20f   :  { %1006 = vrcp.f32 %v389_v35 }
 0x211   :  { %v413_v36 = vpop.xlane.xlu1 %412 }
 0x212   :  { %1008 = vrcp.f32 %v413_v36 }
 0x213   :  { %v398_v37 = vpop.xlane.xlu0 %397 }
 0x214   :  { %1010 = vrcp.f32 %v398_v37 }
 0x215   :  { %v422_v38 = vpop.xlane.xlu1 %421 }
 0x216   :  { %1012 = vrcp.f32 %v422_v38 }
 0x217   :  { %v1003_v40 = vpop.eup %1002  ;;  %v395_v41 = vpop.xlane.xlu0 %394 }
 0x218   :  { %1014 = vrcp.f32 %v395_v41  ;;  %v470_v44 = vmul.f32 1.1111112, %v1003_v40 }
 0x219   :  { %v419_v42 = vpop.xlane.xlu1 %418 }
 0x21a   :  { %1016 = vrcp.f32 %v419_v42  ;;  %v500_v55 = vmul.f32 %v1258_v34, %v470_v44  ;;  %v447_v42 = vld [vmem:[%s1415_s0 + $0x60] sm:$0xff] }
 0x21b   :  { %v1005_v45 = vpop.eup %1004  ;;  %v404_v46 = vpop.xlane.xlu0 %403  ;;  %vm463_vm11 = vcmp.ge.u32.totalorder %v447_v42, 429496730 }
 0x21c   :  { %v1007_v48 = vpop.eup %1006  ;;  %1018 = vrcp.f32 %v404_v46  ;;  %v486_v51 = vmul.f32 1.1111112, %v1005_v45  ;;  %v516_v4 = vsel %vm452_vm2, %v500_v55, 0.0  ;;  %v448_v46 = vld [vmem:[%s1415_s0 + $0x68] sm:$0xff] }
 0x21d   :  { %v468_v52 = vmul.f32 1.1111112, %v1007_v48  ;;  %v428_v53 = vpop.xlane.xlu1 %427  ;;  %vm464_vm12 = vcmp.ge.u32.totalorder %v448_v46, 429496730 }
 0x21e   :  { %1020 = vrcp.f32 %v428_v53  ;;  %v508_v34 = vmul.f32 %v1266_v43, %v486_v51  ;;  %v437_v43 = vld [vmem:[%s1415_s0 + $0x10] sm:$0xff] }
 0x21f   :  { %v1009_v57 = vpop.eup %1008  ;;  %v401_v60 = vpop.xlane.xlu0 %400  ;;  %v499_v61 = vmul.f32 %v1263_v39, %v468_v52  ;;  %vm453_vm5 = vcmp.ge.u32.totalorder %v437_v43, 429496730 }
 0x220   :  { %v484_v62 = vmul.f32 1.1111112, %v1009_v57  ;;  %1022 = vrcp.f32 %v401_v60  ;;  %v524_v14 = vsel %vm460_vm4, %v508_v34, 0.0 }
 0x221   :  { %v1011_v63 = vpop.eup %1010  ;;  %v425_v0 = vpop.xlane.xlu1 %424  ;;  %v515_v2 = vsel %vm451_vm1, %v499_v61, 0.0 }
 0x222   :  { %1024 = vrcp.f32 %v425_v0  ;;  %934 = vmatprep.mubr.msk.f32.mxu0 %vm290_vm0, %v515_v2  ;;  %v507_v7 = vmul.f32 %v1273_v49, %v484_v62  ;;  %v474_v9 = vmul.f32 1.1111112, %v1011_v63  ;;  %v438_v49 = vld [vmem:[%s1415_s0 + $0x18] sm:$0xff] }
 0x223   :  { %v1013_v3 = vpop.eup %1012  ;;  %935 = vmatmul.mubr.msk.f32.vlgmr.msra.gmra.mxu0 %vm290_vm0, %v516_v4  ;;  %v407_v39 = vpop.xlane.xlu0 %406  ;;  %vm454_vm6 = vcmp.ge.u32.totalorder %v438_v49, 429496730  ;;  %v450_v2 = vld [vmem:[%s1415_s0 + $0x78] sm:$0xff] }
 0x224   :  { %1026 = vrcp.f32 %v407_v39  ;;  %v523_v5 = vsel %vm459_vm3, %v507_v7, 0.0  ;;  %v490_v16 = vmul.f32 1.1111112, %v1013_v3  ;;  %v502_v25 = vmul.f32 %v1281_v58, %v474_v9 }
 0x225   :  { %v1015_v12 = vpop.eup %1014  ;;  %954 = vmatprep.mubr.msk.f32.mxu1 %vm290_vm0, %v523_v5  ;;  %v431_v18 = vpop.xlane.xlu1 %430  ;;  %vm466_vm1 = vcmp.ge.u32.totalorder %v450_v2, 429496730 }
 0x226   :  { %v472_v19 = vmul.f32 1.1111112, %v1015_v12  ;;  %1028 = vrcp.f32 %v431_v18  ;;  %955 = vmatmul.mubr.msk.f32.vlgmr.msra.gmra.mxu1 %vm290_vm0, %v524_v14  ;;  %v510_v31 = vmul.f32 %v1276_v54, %v490_v16  ;;  %v518_v36 = vsel %vm454_vm6, %v502_v25, 0.0 }
 0x227   :  { %v1017_v23 = vpop.eup %1016  ;;  %v410_v24 = vpop.xlane.xlu0 %409 }
 0x228   :  { %v488_v28 = vmul.f32 1.1111112, %v1017_v23  ;;  %1030 = vrcp.f32 %v410_v24  ;;  %v501_v27 = vmul.f32 %v1291_v6, %v472_v19  ;;  %v439_v6 = vld [vmem:[%s1415_s0 + $0x20] sm:$0xff]  ;;  %v526_v54 = vsel %vm462_vm8, %v510_v31, 0.0 }
 0x229   :  { %v1019_v29 = vpop.eup %1018  ;;  %v434_v30 = vpop.xlane.xlu1 %433  ;;  %vm455_vm9 = vcmp.ge.u32.totalorder %v439_v6, 429496730 }
 0x22a   :  { %1032 = vrcp.f32 %v434_v30  ;;  %v517_v32 = vsel %vm453_vm5, %v501_v27, 0.0  ;;  %v509_v33 = vmul.f32 %v1286_v1, %v488_v28  ;;  %v478_v35 = vmul.f32 1.1111112, %v1019_v29  ;;  %v440_v1 = vld [vmem:[%s1415_s0 + $0x28] sm:$0xff] }
 0x22b   :  { %v1021_v58 = vpop.eup %1020  ;;  %937 = vmatprep.mubr.msk.f32.mxu0 %vm290_vm0, %v517_v32  ;;  %vm456_vm10 = vcmp.ge.u32.totalorder %v440_v1, 429496730 }
 0x22c   :  { %938 = vmatmul.mubr.msk.f32.gmra.mxu0 %vm290_vm0, %v518_v36  ;;  %v525_v37 = vsel %vm461_vm7, %v509_v33, 0.0  ;;  %v494_v40 = vmul.f32 1.1111112, %v1021_v58  ;;  %v504_v45 = vmul.f32 %v1299_v10, %v478_v35 }
 0x22d   :  { %v1023_v38 = vpop.eup %1022  ;;  %957 = vmatprep.mubr.msk.f32.mxu1 %vm290_vm0, %v525_v37 }
 0x22e   :  { %v476_v41 = vmul.f32 1.1111112, %v1023_v38  ;;  %958 = vmatmul.mubr.msk.f32.gmra.mxu1 %vm290_vm0, %v526_v54  ;;  %v512_v52 = vmul.f32 %v1295_v8, %v494_v40 }
 0x22f   :  { %v1025_v44 = vpop.eup %1024 }
 0x230   :  { %v492_v47 = vmul.f32 1.1111112, %v1025_v44  ;;  %v503_v48 = vmul.f32 %v1307_v13, %v476_v41  ;;  %v520_v13 = vsel %vm456_vm10, %v504_v45, 0.0  ;;  %v528_v62 = vsel %vm464_vm12, %v512_v52, 0.0 }
 0x231   :  { %v1027_v51 = vpop.eup %1026 }
 0x232   :  { %v480_v53 = vmul.f32 1.1111112, %v1027_v51  ;;  %v519_v55 = vsel %vm455_vm9, %v503_v48, 0.0  ;;  %v511_v10 = vmul.f32 %v1303_v11, %v492_v47  ;;  %v442_v11 = vld [vmem:[%s1415_s0 + $0x38] sm:$0xff]  ;;  %s1081_s0 = smov [#allocation5]  }
 0x233   :  { %v1029_v57 = vpop.eup %1028  ;;  %940 = vmatprep.mubr.msk.f32.mxu0 %vm290_vm0, %v519_v55  ;;  %vm458_vm15 = vcmp.ge.u32.totalorder %v442_v11, 429496730  ;;  %s810_s23 = sshll.u32 %s1081_s0, 4  ;;  %s811_s23 = int_to_ptr.vmem [resolvable:$true] %s810_s23 }
 0x234   :  { %v496_v59 = vmul.f32 1.1111112, %v1029_v57  ;;  %941 = vmatmul.mubr.msk.f32.gmra.mxu0 %vm290_vm0, %v520_v13  ;;  %v527_v60 = vsel %vm463_vm11, %v511_v10, 0.0  ;;  %v505_v8 = vmul.f32 %v1315_v17, %v480_v53  ;;  %s1054_s2 = scalar_lea.vmem %s811_s23, 2048  ;;  %p1059_p6 = scmp.lt.s32.totalorder %s811_s23, %s811_s23 }
 0x235   :  { %v1031_v61 = vpop.eup %1030  ;;  %960 = vmatprep.mubr.msk.f32.mxu1 %vm290_vm0, %v527_v60  ;;  %p1055_p5 = scmp.ne.s32.totalorder %s811_s23, %s1054_s2  ;;  %p1060_p7 = scmp.lt.s32.totalorder %s1054_s2, %s1054_s2 }
 0x236   :  { %v482_v63 = vmul.f32 1.1111112, %v1031_v61  ;;  %961 = vmatmul.mubr.msk.f32.gmra.mxu1 %vm290_vm0, %v528_v62  ;;  %v521_v34 = vsel %vm457_vm13, %v505_v8, 0.0  ;;  %v513_v0 = vmul.f32 %v1311_v15, %v496_v59 }
 0x237   :  { %v1033_v17 = vpop.eup %1032  ;;  %943 = vmatprep.mubr.msk.f32.mxu0 %vm290_vm0, %v521_v34  ;;  %p1061_p8 = por %p1060_p7, %p1059_p6 }
 0x238   :  { %v506_v4 = vmul.f32 %v1323_v22, %v482_v63  ;;  %v498_v7 = vmul.f32 1.1111112, %v1033_v17  ;;  %v529_v3 = vsel %vm465_vm14, %v513_v0, 0.0 }
 0x239   :  { %963 = vmatprep.mubr.msk.f32.mxu1 %vm290_vm0, %v529_v3  ;;  %p1062_p9 = pnand %p1061_p8, %p1055_p5 }
 0x23a   :  { %v514_v9 = vmul.f32 %v1319_v20, %v498_v7  ;;  %v522_v39 = vsel %vm458_vm15, %v506_v4, 0.0 }
 0x23b   :  { %944 = vmatmul.mubr.msk.f32.gmra.mxu0 %vm290_vm0, %v522_v39 }
 0x23c   :  { %v530_v15 = vsel %vm466_vm1, %v514_v9, 0.0 }
 0x23d   :  { %964 = vmatmul.mubr.msk.f32.gmra.mxu1 %vm290_vm0, %v530_v15 }
 0x2e3   :  { %v936_v5 = vpop.f32.mrf.mxu0 }
 0x2e4   :  { %790 = vst [vmem:[#allocation5 + $0x8] sm:$0xff] %v936_v5 }
 0x2e5   :  { %v621_v43 = vpop.f32.mrf.mxu0 }
 0x2e6   :  { %789 = vst [vmem:[#allocation5] sm:$0xff] %v621_v43  ;;  %v956_v12 = vpop.f32.mrf.mxu1 }
 0x2e7   :  { %798 = vst [vmem:[#allocation5 + $0x48] sm:$0xff] %v956_v12 }
 0x2e8   :  { %v750_v22 = vpop.f32.mrf.mxu1 }
 0x2e9   :  { %797 = vst [vmem:[#allocation5 + $0x40] sm:$0xff] %v750_v22 }
 0x2ec   :  { %v939_v14 = vpop.f32.mrf.mxu0 }
 0x2ed   :  { %792 = vst [vmem:[#allocation5 + $0x18] sm:$0xff] %v939_v14 }
 0x2ee   :  { %v631_v16 = vpop.f32.mrf.mxu0  ;;  %v959_v18 = vpop.f32.mrf.mxu1 }
 0x2ef   :  { %791 = vst [vmem:[#allocation5 + $0x10] sm:$0xff] %v631_v16  ;;  %800 = vst [vmem:[#allocation5 + $0x58] sm:$0xff] %v959_v18 }
 0x2f0   :  { %v760_v20 = vpop.f32.mrf.mxu1 }
 0x2f1   :  { %799 = vst [vmem:[#allocation5 + $0x50] sm:$0xff] %v760_v20 }
 0x2f4   :  { %v942_v49 = vpop.f32.mrf.mxu0 }
 0x2f5   :  { %794 = vst [vmem:[#allocation5 + $0x28] sm:$0xff] %v942_v49 }
 0x2f6   :  { %v641_v19 = vpop.f32.mrf.mxu0  ;;  %v962_v21 = vpop.f32.mrf.mxu1 }
 0x2f7   :  { %793 = vst [vmem:[#allocation5 + $0x20] sm:$0xff] %v641_v19  ;;  %802 = vst [vmem:[#allocation5 + $0x68] sm:$0xff] %v962_v21 }
 0x2f8   :  { %v770_v23 = vpop.f32.mrf.mxu1 }
 0x2f9   :  { %801 = vst [vmem:[#allocation5 + $0x60] sm:$0xff] %v770_v23 }
 0x2fb   :  { %v945_v24 = vpop.f32.mrf.mxu0 }
 0x2fc   :  { %796 = vst [vmem:[#allocation5 + $0x38] sm:$0xff] %v945_v24 }
 0x2fd   :  { %v651_v25 = vpop.f32.mrf.mxu0  ;;  %v965_v26 = vpop.f32.mrf.mxu1 }
 0x2fe   :  { %795 = vst [vmem:[#allocation5 + $0x30] sm:$0xff] %v651_v25  ;;  %804 = vst [vmem:[#allocation5 + $0x78] sm:$0xff] %v965_v26 }
 0x2ff   :  { %v780_v28 = vpop.f32.mrf.mxu1 }
 0x300   :  { %803 = vst [vmem:[#allocation5 + $0x70] sm:$0xff] %v780_v28 }
 0x301   :  { %1065 = shalt.err (!%p1062_p9)
}
 0x302   :  { %816 = dma.vmem_to_hbm [thread:$0]  %s811_s23, 2048, %s1419_s4, [#allocation4], %s1079_s18, %s1079_s18, %s1080_s19  }
 0x303   :  { %1076 = dma.done.wait [#allocation4], 2048  }
 0x304   :  { %1077 = vsyncadd [#allocation4], 4294965248 }
 0x305   :  { %820 = vsyncpa [#allocation3], 1 }
 0x306   :  { %821 = vsyncpa [#allocation4], 1 }

</bundles_post_ra>
